<compile_context>
chip_gen: v6e
topology: v6e:2x2x1
jax: 0.10.0
libtpu: 0.0.40
codegen_flags: <defaults>
</compile_context>

<pallas_src>
import jax
import jax.numpy as jnp
from jax.experimental import pallas as pl
from jax.experimental.pallas import tpu as pltpu


# ----------------------------------------------------------------------------
# Fused kernel: per-layer extraction + HyperFeature aggregation.
#
#   out[r_tile] = out_bias + sum_l (patches[r_tile] @ embed'[l]) @ w'[l]
#
# grid = (R_tiles, L):
#   axis 0 (rows)   : "parallel"  — independent output tiles (megacore on v7x)
#   axis 1 (layers) : "arbitrary" — sequential reduction; the output block
#                     index is constant along it, so the (row_tile, D) output
#                     stays resident in VMEM and is used as the accumulator.
# The patches tile's index_map does not depend on l, so Pallas skips its
# re-DMA across consecutive layer steps (tile stays resident).
# ----------------------------------------------------------------------------
def _fused_kernel(p_ref, e_ref, w_ref, b_ref, o_ref):
    l = pl.program_id(1)

    @pl.when(l == 0)
    def _():
        # Initialize the resident output tile with the folded preprocessing
        # bias (constant (1, D) row broadcast over the tile).
        o_ref[...] = jnp.broadcast_to(b_ref[...], o_ref.shape)

    proj = jnp.dot(p_ref[...], e_ref[0], preferred_element_type=jnp.float32)
    o_ref[...] += jnp.dot(proj, w_ref[0], preferred_element_type=jnp.float32)


def _pick_row_tile(R):
    # 2048-row tiles => (2048, 256) f32 output tile = 2 MiB (x2 buffers 4 MiB),
    # patches tile ~100 KiB; comfortably inside default scoped VMEM on
    # v5e/v6e/v7x.  Sweepable: v6e has headroom for 4096-8192.
    target = 2048
    if R >= target:
        return target
    return max(8, ((R + 7) // 8) * 8)  # small inputs: one 8-aligned tile


def fused_extract_aggregate(patches, embed_scaled, w_scaled, out_bias,
                            row_tile=None):
    """patches: (R, P) raw-pixel patches; embed_scaled: (L, P, F);
    w_scaled: (L, F, D); out_bias: (1, D)  ->  (R, D) float32."""
    R, P = patches.shape
    L, _, F = embed_scaled.shape
    D = w_scaled.shape[-1]

    if row_tile is None:
        row_tile = _pick_row_tile(R)
    Rp = pl.cdiv(R, row_tile) * row_tile
    if Rp != R:
        # zero rows contribute nothing beyond the bias; sliced off below.
        patches = jnp.pad(patches, ((0, Rp - R), (0, 0)))

    out = pl.pallas_call(
        _fused_kernel,
        out_shape=jax.ShapeDtypeStruct((Rp, D), jnp.float32),
        grid_spec=pltpu.PrefetchScalarGridSpec(
            num_scalar_prefetch=0,
            grid=(Rp // row_tile, L),  # rows first (parallel), layers last (reduction)
            in_specs=[
                pl.BlockSpec((row_tile, P), lambda r, l: (r, 0)),   # patches tile
                pl.BlockSpec((1, P, F), lambda r, l: (l, 0, 0)),    # embed'[l]
                pl.BlockSpec((1, F, D), lambda r, l: (l, 0, 0)),    # w'[l]
                pl.BlockSpec((1, D), lambda r, l: (0, 0)),          # folded bias
            ],
            out_specs=pl.BlockSpec((row_tile, D), lambda r, l: (r, 0)),
        ),
        compiler_params=pltpu.CompilerParams(
            dimension_semantics=("parallel", "arbitrary")),
    )(patches, embed_scaled, w_scaled, out_bias)

    return out[:R] if Rp != R else out


# ----------------------------------------------------------------------------
# Standalone preprocessing kernel (fallback only — NOT used in the fused
# forward path, where the affine is folded into the embedding weights).
# Tiled, lane-dense (128-wide) slabs so it scales to production image sizes.
# ----------------------------------------------------------------------------
def _preprocess_kernel(x_ref, o_ref):
    o_ref[...] = x_ref[...] * jnp.float32(2.0 / 255.0) - jnp.float32(1.0)


def imagenet_to_stable_diffusion(x_nchw, row_tile=1024):
    shape = x_nchw.shape
    n = x_nchw.size
    lanes = 128
    rows = pl.cdiv(n, lanes)
    tr = min(row_tile, max(8, ((rows + 7) // 8) * 8))
    rows_p = pl.cdiv(rows, tr) * tr

    flat = x_nchw.astype(jnp.float32).reshape(-1)
    if rows_p * lanes != n:
        flat = jnp.pad(flat, (0, rows_p * lanes - n))
    x2 = flat.reshape(rows_p, lanes)

    y2 = pl.pallas_call(
        _preprocess_kernel,
        out_shape=jax.ShapeDtypeStruct((rows_p, lanes), jnp.float32),
        grid_spec=pl.GridSpec(
            grid=(rows_p // tr,),
            in_specs=[pl.BlockSpec((tr, lanes), lambda i: (i, 0))],
            out_specs=pl.BlockSpec((tr, lanes), lambda i: (i, 0)),
        ),
        compiler_params=pltpu.CompilerParams(dimension_semantics=("parallel",)),
    )(x2)
    return y2.reshape(-1)[:n].reshape(shape)


# ----------------------------------------------------------------------------
# DIFT module (synthetic, deterministic parameters).
# ----------------------------------------------------------------------------
class DIFTPallas:
    # config mirrors the PyTorch dift_config
    NUM_LAYERS = 12              # len(idxs)
    PROJ_DIM_X4 = 256            # projection_dim_x4
    FEAT_CH = 32                 # stand-in channel width for UNet features
    PATCH = 2                    # space-to-depth patch size for the stand-in

    def __init__(self, in_channels=3, key=jax.random.PRNGKey(42), row_tile=None):
        k1, k2, k3 = jax.random.split(key, 3)
        L, F, D = self.NUM_LAYERS, self.FEAT_CH, self.PROJ_DIM_X4
        P = in_channels * self.PATCH * self.PATCH

        # per-layer patch-embedding ("UNet feature" stand-in)
        self.embed = 0.05 * jax.random.normal(k1, (L, P, F), jnp.float32)
        # per-layer bottleneck projection to projection_dim_x4
        self.w_proj = 0.05 * jax.random.normal(k2, (L, F, D), jnp.float32)
        # learnable mixing weights (softmax-normalized, glue)
        self.mix = jax.nn.softmax(
            0.1 * jax.random.normal(k3, (L,), jnp.float32))

        # --- one-time algebraic folds (exact by linearity of the stand-in) ---
        # imagenet_to_stable_diffusion: x_pre = (2/255)*x - 1, so
        #   x_pre @ embed = x_raw @ ((2/255)*embed) + (-1)*sum_p embed[:,p,:]
        scale = jnp.float32(2.0 / 255.0)
        self.embed_scaled = scale * self.embed                       # (L, P, F)
        feat_bias = -jnp.sum(self.embed, axis=1)                     # (L, F)
        # mixing weights folded into the projection
        self.w_scaled = self.mix[:, None, None] * self.w_proj        # (L, F, D)
        # constant output bias from the folded "-1" shift
        self.out_bias = jnp.einsum(
            "lf,lfd->d", feat_bias, self.w_scaled)[None, :]          # (1, D)

        self.row_tile = row_tile

    def __call__(self, x_nchw):
        B, C, H, W = x_nchw.shape
        p = self.PATCH
        Hf, Wf = H // p, W // p

        # glue: NCHW -> space-to-depth patches (raw [0,255] pixels; the
        # preprocessing affine is folded into the weights).
        # TODO(synk): for production sizes move this layout shuffle into the
        # kernel DMA (strided index_map) or accept NHWC input to avoid the
        # extra HBM pass of a 6-D transpose.
        xp = x_nchw.astype(jnp.float32).reshape(B, C, Hf, p, Wf, p)
        xp = jnp.transpose(xp, (0, 2, 4, 1, 3, 5))           # B,Hf,Wf,C,p,p
        patches = xp.reshape(B * Hf * Wf, C * p * p)          # (R, P)

        # fused extraction + HyperFeature aggregation (single Pallas kernel)
        out2d = fused_extract_aggregate(
            patches, self.embed_scaled, self.w_scaled, self.out_bias,
            row_tile=self.row_tile)                            # (R, 256)

        # glue: back to NCHW feature map
        out = out2d.reshape(B, Hf, Wf, self.PROJ_DIM_X4)
        return jnp.transpose(out, (0, 3, 1, 2))                # (B, 256, Hf, Wf)


# ----------------------------------------------------------------------------
# Pure-JAX reference of the original (unfolded) math, for validation.
# ----------------------------------------------------------------------------
def dift_reference(x_nchw, embed, w_proj, mix, patch):
    x = x_nchw / 255.0 * 2.0 - 1.0
    B, C, H, W = x.shape
    Hf, Wf = H // patch, W // patch
    xp = x.reshape(B, C, Hf, patch, Wf, patch)
    xp = jnp.transpose(xp, (0, 2, 4, 1, 3, 5)).reshape(B * Hf * Wf, -1)
    feats = jnp.einsum("rp,lpf->lrf", xp, embed)
    out = jnp.einsum("l,lrf,lfd->rd", mix, feats, w_proj)
    out = out.reshape(B, Hf, Wf, -1)
    return jnp.transpose(out, (0, 3, 1, 2))


if __name__ == "__main__":
    key = jax.random.PRNGKey(0)
    # small image batch in ImageNet-style [0, 255] range, NCHW
    x = jax.random.uniform(key, (2, 3, 16, 16), jnp.float32,
                           minval=0.0, maxval=255.0)

    model = DIFTPallas(in_channels=3)
    y = jax.block_until_ready(model(x))

    assert y.shape == (2, 256, 8, 8), y.shape
    assert y.dtype == jnp.float32
    assert bool(jnp.all(jnp.isfinite(y)))

    # numerics vs. the unfolded pure-JAX reference
    y_ref = dift_reference(x, model.embed, model.w_proj, model.mix, model.PATCH)
    max_err = float(jnp.max(jnp.abs(y - y_ref)))
    assert bool(jnp.allclose(y, y_ref, rtol=1e-2, atol=1e-3)), max_err

    # fallback preprocessing kernel sanity check (not in the hot path)
    pre = jax.block_until_ready(imagenet_to_stable_diffusion(x))
    assert bool(jnp.allclose(pre, x / 255.0 * 2.0 - 1.0, atol=1e-5))

    print("KERNEL_OK")
</pallas_src>

<mosaic_0001>
module attributes {stable_mosaic.version = 11 : i64} {
  func.func @_fused_kernel(%arg0: i32, %arg1: i32, %arg2: memref<128x12xf32, #tpu.memory_space<vmem>>, %arg3: memref<1x12x32xf32, #tpu.memory_space<vmem>>, %arg4: memref<1x32x256xf32, #tpu.memory_space<vmem>>, %arg5: memref<1x256xf32, #tpu.memory_space<vmem>>, %arg6: memref<128x256xf32, #tpu.memory_space<vmem>>) attributes {dimension_semantics = [#tpu.dimension_semantics<parallel>, #tpu.dimension_semantics<arbitrary>], iteration_bounds = array<i64: 1, 12>, scalar_prefetch = 0 : i64, scratch_operands = 0 : i64, tpu.core_type = #tpu.core_type<tc>, window_params = [{transform_indices = @transform_0, window_bounds = array<i64: 128, 12>}, {transform_indices = @transform_1, window_bounds = array<i64: 1, 12, 32>}, {transform_indices = @transform_2, window_bounds = array<i64: 1, 32, 256>}, {pipeline_mode = #tpu.pipeline_mode<synchronous>, transform_indices = @transform_3, window_bounds = array<i64: 1, 256>}, {transform_indices = @transform_4, window_bounds = array<i64: 128, 256>}]} {
    %c0_i32 = arith.constant 0 : i32
    %0 = arith.cmpi eq, %arg1, %c0_i32 : i32
    %1 = arith.extui %0 : i1 to i32
    %c0_i32_0 = arith.constant 0 : i32
    %2 = arith.cmpi ne, %1, %c0_i32_0 : i32
    scf.if %2 {
      %c0_13 = arith.constant 0 : index
      %c0_14 = arith.constant 0 : index
      %13 = vector.load %arg5[%c0_13, %c0_14] : memref<1x256xf32, #tpu.memory_space<vmem>>, vector<1x256xf32>
      %14 = vector.shape_cast %13 : vector<1x256xf32> to vector<1x256xf32>
      %15 = vector.broadcast %14 : vector<1x256xf32> to vector<128x256xf32>
      %c0_15 = arith.constant 0 : index
      %c0_16 = arith.constant 0 : index
      %16 = vector.load %arg6[%c0_15, %c0_16] : memref<128x256xf32, #tpu.memory_space<vmem>>, vector<128x256xf32>
      tpu.vector_store %arg6[%c0_15, %c0_16], %15 {strides = array<i32>} : memref<128x256xf32, #tpu.memory_space<vmem>>, vector<128x256xf32>,
    } else {
    }
    %c0 = arith.constant 0 : index
    %c0_1 = arith.constant 0 : index
    %3 = vector.load %arg2[%c0, %c0_1] : memref<128x12xf32, #tpu.memory_space<vmem>>, vector<128x12xf32>
    %c0_2 = arith.constant 0 : index
    %c0_3 = arith.constant 0 : index
    %c0_4 = arith.constant 0 : index
    %4 = vector.load %arg3[%c0_2, %c0_3, %c0_4] : memref<1x12x32xf32, #tpu.memory_space<vmem>>, vector<1x12x32xf32>
    %5 = vector.shape_cast %4 : vector<1x12x32xf32> to vector<12x32xf32>
    %cst = arith.constant dense<0.000000e+00> : vector<128x32xf32>
    %6 = tpu.matmul %3, %5, %cst {dimension_numbers = #tpu.dot_dimension_numbers<[1], [0], [0], [1], [0, 0, 1, 1], [], []>} : vector<128x12xf32>, vector<12x32xf32>, vector<128x32xf32> -> vector<128x32xf32>
    %c0_5 = arith.constant 0 : index
    %c0_6 = arith.constant 0 : index
    %7 = vector.load %arg6[%c0_5, %c0_6] : memref<128x256xf32, #tpu.memory_space<vmem>>, vector<128x256xf32>
    %c0_7 = arith.constant 0 : index
    %c0_8 = arith.constant 0 : index
    %c0_9 = arith.constant 0 : index
    %8 = vector.load %arg4[%c0_7, %c0_8, %c0_9] : memref<1x32x256xf32, #tpu.memory_space<vmem>>, vector<1x32x256xf32>
    %9 = vector.shape_cast %8 : vector<1x32x256xf32> to vector<32x256xf32>
    %cst_10 = arith.constant dense<0.000000e+00> : vector<128x256xf32>
    %10 = tpu.matmul %6, %9, %cst_10 {dimension_numbers = #tpu.dot_dimension_numbers<[1], [0], [0], [1], [0, 0, 1, 1], [], []>} : vector<128x32xf32>, vector<32x256xf32>, vector<128x256xf32> -> vector<128x256xf32>
    %11 = arith.addf %7, %10 : vector<128x256xf32>
    %c0_11 = arith.constant 0 : index
    %c0_12 = arith.constant 0 : index
    %12 = vector.load %arg6[%c0_11, %c0_12] : memref<128x256xf32, #tpu.memory_space<vmem>>, vector<128x256xf32>
    tpu.vector_store %arg6[%c0_11, %c0_12], %11 {strides = array<i32>} : memref<128x256xf32, #tpu.memory_space<vmem>>, vector<128x256xf32>,
    return
  }
  func.func @transform_0(%arg0: i32, %arg1: i32) -> (i32, i32) {
    %c0_i32 = arith.constant 0 : i32
    %c0_i32_0 = arith.constant 0 : i32
    return %arg0, %c0_i32 : i32, i32
  }
  func.func @transform_1(%arg0: i32, %arg1: i32) -> (i32, i32, i32) {
    %c0_i32 = arith.constant 0 : i32
    %c0_i32_0 = arith.constant 0 : i32
    %c0_i32_1 = arith.constant 0 : i32
    return %arg1, %c0_i32, %c0_i32_0 : i32, i32, i32
  }
  func.func @transform_2(%arg0: i32, %arg1: i32) -> (i32, i32, i32) {
    %c0_i32 = arith.constant 0 : i32
    %c0_i32_0 = arith.constant 0 : i32
    %c0_i32_1 = arith.constant 0 : i32
    return %arg1, %c0_i32, %c0_i32_0 : i32, i32, i32
  }
  func.func @transform_3(%arg0: i32, %arg1: i32) -> (i32, i32) {
    %c0_i32 = arith.constant 0 : i32
    %c0_i32_0 = arith.constant 0 : i32
    %c0_i32_1 = arith.constant 0 : i32
    return %c0_i32, %c0_i32_0 : i32, i32
  }
  func.func @transform_4(%arg0: i32, %arg1: i32) -> (i32, i32) {
    %c0_i32 = arith.constant 0 : i32
    %c0_i32_0 = arith.constant 0 : i32
    return %arg0, %c0_i32 : i32, i32
  }
}

</mosaic_0001>

<bundles_post_ra>
// kernel: tpu_custom_call.1
= control target key start
LH: loop header
LB: loop body
LE: loop exit
PB: predicated region body
PF: predicated region fallthrough
CT: control target
= control target key end

     0   :  { %9 = vsyncpa [#allocation3], 0  ;;  %s1566_s0 = inlined_call_operand.vmem [shape: f32[128,12], index: 0, kind: input, shape index: {}]   ;;  %s1567_s1 = inlined_call_operand.hbm [shape: f32[12,12,32], index: 1, kind: input, shape index: {}]   ;;  %s1568_s2 = inlined_call_operand.hbm [shape: f32[12,32,256], index: 2, kind: input, shape index: {}]   ;;  %s1569_s3 = inlined_call_operand.vmem [shape: f32[1,256], index: 3, kind: input, shape index: {}]   ;;  %s1570_s4 = inlined_call_operand.hbm [shape: f32[128,256], index: 4, kind: output, shape index: {}]  }
   0x1   :  { %11 = vsyncpa [#allocation3 + $0x1], 0 }
   0x2   :  { %12 = vsyncpa [#allocation6], 0 }
   0x3   :  { %14 = vsyncpa [#allocation6 + $0x1], 0 }
   0x4   :  { %15 = vsyncpa [#allocation4], 0  ;;  %s1330_s15 = smov 0   ;;  %s1332_s16 = smov 0  }
   0x5   :  { %s1334_s17 = smov 0   ;;  %s1336_s18 = smov 0  }
   0x6   :  { %s1338_s19 = smov 0   ;;  %s1340_s20 = smov 0  }
   0x7 LB: > { %s974_s21 = sadd.s32 4294967295, %s1293_s20   ;;  %s30_s22 = sadd.s32 1, %s1289_s19  ;;  %s1293_s20 = sphi %s1340_s20, %s21_s20   ;;  %s1289_s19 = sphi %s1338_s19, %s1580_s19   ;;  %s1285_s18 = sphi %s1336_s18, %s1579_s18   ;;  %s1281_s17 = sphi %s1334_s17, %s1578_s17   ;;  %s1277_s16 = sphi %s1332_s16, %s1577_s16   ;;  %s1273_s15 = sphi %s1330_s15, %s1576_s15  }
   0x8   : > { %p31_p0 = scmp.ge.s32.totalorder %s30_s22, 12  ;;  %s66_s23 = sadd.s32 1, %s1281_s17 }
   0x9   : > { %p73_p1 = scmp.ne.s32.totalorder %s1281_s17, %s1277_s16  ;;  %p74_p2 = scmp.eq.s32.totalorder %s1293_s20, 0 }
   0xa   : > { %s1582_s22 = smov (%p31_p0, %s30_s22), 0  ;;  %p79_p4 = scmp.ne.s32.totalorder %s1277_s16, %s1273_s15 }
   0xb   : > { %p1366_p3 = por %p74_p2, %p73_p1  ;;  %s63_s25 = ssub.s32 %s1289_s19, %s1582_s22 }
   0xc   : > { %p80_p5 = scmp.eq.s32.totalorder %s974_s21, 0  ;;  %p64_p6 = scmp.eq.s32.totalorder %s63_s25, 0 }
   0xd   : > { %p1096_p8 = scmp.lt.s32.totalorder %s1293_s20, 12  ;;  %s1384_s28 = sand.u32 1, %s1281_s17  }
   0xe   : > { %p1375_p7 = por %p80_p5, %p79_p4  ;;  %s1025_s29 = sshll.u32 %s1289_s19, 8 }
   0xf   : > { %s1381_s27 = scalar_select %p64_p6, %s1281_s17, %s66_s23  }
  0x10   : > { %s978_s30 = sshll.u32 %s1384_s28, 4  ;;  %s198_s7 = scalar_lea.hbm %s1567_s1, %s1025_s29 }
  0x11   : > { %s192_s8 = scalar_lea.vmem [#allocation2], %s978_s30  ;;  %p1393_p9 = pnand %p1096_p8, %p1366_p3 }
  0x12   : > { %s199_s9 = sshll.u32 %s192_s8, 4  ;;  %s189_s11 = scalar_lea.sflag [#allocation3], %s1384_s28  ;;  %s200_s9 = int_to_ptr.vmem [resolvable:$true] %s199_s9 }
  0x13   : > { %p1157_p10 = pneg %p1393_p9  ;;  %s1168_s12 = scalar_lea.vmem %s200_s9, 256 }
  0x14   : > { %p1169_p11 = scmp.ne.s32.totalorder %s200_s9, %s1168_s12  ;;  %s1295_s13 = smov [#allocation2]  }
  0x15   : > { %s1173_s14 = sshll.u32 %s1295_s13, 4  ;;  %s1174_s14 = int_to_ptr.vmem [resolvable:$false] %s1173_s14 }
  0x16   : > { %p1171_p12 = pnand %p1169_p11, %p1157_p10  ;;  %s1175_s15 = scalar_lea.vmem %s1174_s14, 512 }
  0x17   : > { %p1176_p0 = scmp.lt.s32.totalorder %s200_s9, %s1174_s14  ;;  %p1177_p1 = scmp.lt.s32.totalorder %s1175_s15, %s1168_s12 }
  0x18   : > { %p1172_p13 = pneg %p1171_p12 }
  0x19   : > { %p1178_p2 = por %p1177_p1, %p1176_p0 }
  0x1b   : > { %p1179_p3 = pnand %p1178_p2, %p1172_p13 }
  0x1d   : > { %1182 = shalt.err (!%p1179_p3)
}
  0x1e   : > { %s1296_s23 = smov 128   ;;  %s1297_s24 = smov 8  }
  0x1f   : > { %1092 = dma.hbm_to_vmem [thread:$0]  (!%p1393_p9), %s198_s7, 256, %s200_s9, %s189_s11, %s1296_s23, %s1296_s23, %s1297_s24  }
  0x20   : > { %p984_p4 = scmp.ge.s32.totalorder %s1293_s20, 1  ;;  %p228_p5 = scmp.lt.s32.totalorder %s1293_s20, 13 }
  0x21   : > { %s981_s25 = sshll.u32 %s1384_s28, 6  ;;  %s1026_s30 = sshll.u32 %s1289_s19, 10 }
  0x22   : > { %p1408_p6 = pnand %p984_p4, %p228_p5  ;;  %s213_s5 = scalar_lea.vmem [#allocation5], %s981_s25 }
  0x23   : > { %s220_s6 = sshll.u32 %s213_s5, 4  ;;  %s219_s13 = scalar_lea.hbm %s1568_s2, %s1026_s30  ;;  %s221_s6 = int_to_ptr.vmem [resolvable:$true] %s220_s6 }
  0x24   : > { %s210_s14 = scalar_lea.sflag [#allocation6], %s1384_s28  ;;  %s1196_s15 = scalar_lea.vmem %s221_s6, 1024 }
  0x25   : > { %p1197_p8 = scmp.ne.s32.totalorder %s221_s6, %s1196_s15  ;;  %s1298_s7 = smov [#allocation5]  }
  0x26   : > { %s1201_s9 = sshll.u32 %s1298_s7, 4  ;;  %s1202_s9 = int_to_ptr.vmem [resolvable:$false] %s1201_s9 }
  0x27   : > { %p1199_p11 = pnand %p1197_p8, %p1157_p10  ;;  %s1203_s11 = scalar_lea.vmem %s1202_s9, 2048 }
  0x28   : > { %p1204_p13 = scmp.lt.s32.totalorder %s221_s6, %s1202_s9  ;;  %p1205_p0 = scmp.lt.s32.totalorder %s1203_s11, %s1196_s15 }
  0x29   : > { %p1200_p12 = pneg %p1199_p11 }
  0x2a   : > { %p1206_p1 = por %p1205_p0, %p1204_p13 }
  0x2c   : > { %p1207_p2 = pnand %p1206_p1, %p1200_p12 }
  0x2e   : > { %1210 = shalt.err (!%p1207_p2)
}
  0x2f   : > { %s1299_s23 = smov 256   ;;  %s1300_s24 = smov 16  }
  0x30   : > { %1095 = dma.hbm_to_vmem [thread:$0]  (!%p1393_p9), %s219_s13, 1024, %s221_s6, %s210_s14, %s1299_s23, %s1299_s23, %s1300_s24  }
  0x31   : > { %232 = sbr.rel (%p1408_p6) target bundleno = 544 (0x220), region = 36  ;;  %s234_s28 = sand.u32 (!%p1408_p6), 1, %s1277_s16  }
  0x32   : > { %s985_s25 = sshll.u32 (!%p1408_p6), %s234_s28, 4  ;;  %s235_s30 = scalar_lea.sflag (!%p1408_p6), [#allocation3], %s234_s28 }
  0x33   : > { %s1425_s5 = scalar_lea.vmem (!%p1408_p6), [#allocation2], %s985_s25 }
  0x36   : > { %1260 = dma.done.wait (%p1375_p7), %s235_s30, 256  }
  0x37   : > { %1262 = vsyncadd (%p1375_p7), %s235_s30, 4294967040  ;;  %s986_s8 = sshll.u32 %s234_s28, 6  ;;  %s244_s12 = scalar_lea.sflag [#allocation6], %s234_s28 }
  0x38   : > { %s1431_s10 = scalar_lea.vmem [#allocation5], %s986_s8 }
  0x39   : > { %1264 = dma.done.wait (%p1375_p7), %s244_s12, 1024  }
  0x3a   : > { %1266 = vsyncadd (%p1375_p7), %s244_s12, 4294966272  ;;  %p987_p9 = scmp.ne.s32.totalorder %s1285_s18, 0 }
  0x3c   : > { %287 = sbr.rel (%p987_p9) target bundleno = 89 (0x59), region = 48 }
  0x41   : > { %v290_v0 = vlaneseq  ;;  %v288_v2 = vld [vmem:[%s1569_s3] sm:$0x3] }
  0x43   : > { %v291_v1 = vshrl.u32 %v290_v0, 7 }
  0x45   : > { %v292_v3 = vsub.s32 0, %v291_v1  ;;  %v296_v4 = vsub.s32 1, %v291_v1 }
  0x47   : > { %v293_v5 = vrot.slane %v288_v2, %v292_v3  ;;  %v297_v6 = vrot.slane %v288_v2, %v296_v4 }
  0x49   : > { %300 = vst [vmem:[#allocation7] sm:$0xff] %v293_v5  ;;  %302 = vst [vmem:[#allocation7 + $0x10] sm:$0xff] %v293_v5 }
  0x4a   : > { %304 = vst [vmem:[#allocation7 + $0x20] sm:$0xff] %v293_v5  ;;  %306 = vst [vmem:[#allocation7 + $0x30] sm:$0xff] %v293_v5 }
  0x4b   : > { %308 = vst [vmem:[#allocation7 + $0x40] sm:$0xff] %v293_v5  ;;  %310 = vst [vmem:[#allocation7 + $0x50] sm:$0xff] %v293_v5 }
  0x4c   : > { %312 = vst [vmem:[#allocation7 + $0x60] sm:$0xff] %v293_v5  ;;  %314 = vst [vmem:[#allocation7 + $0x70] sm:$0xff] %v293_v5 }
  0x4d   : > { %316 = vst [vmem:[#allocation7 + $0x80] sm:$0xff] %v293_v5  ;;  %318 = vst [vmem:[#allocation7 + $0x90] sm:$0xff] %v293_v5 }
  0x4e   : > { %320 = vst [vmem:[#allocation7 + $0xa0] sm:$0xff] %v293_v5  ;;  %322 = vst [vmem:[#allocation7 + $0xb0] sm:$0xff] %v293_v5 }
  0x4f   : > { %324 = vst [vmem:[#allocation7 + $0xc0] sm:$0xff] %v293_v5  ;;  %326 = vst [vmem:[#allocation7 + $0xd0] sm:$0xff] %v293_v5 }
  0x50   : > { %328 = vst [vmem:[#allocation7 + $0xe0] sm:$0xff] %v293_v5  ;;  %330 = vst [vmem:[#allocation7 + $0xf0] sm:$0xff] %v293_v5 }
  0x51   : > { %301 = vst [vmem:[#allocation7 + $0x8] sm:$0xff] %v297_v6  ;;  %303 = vst [vmem:[#allocation7 + $0x18] sm:$0xff] %v297_v6 }
  0x52   : > { %305 = vst [vmem:[#allocation7 + $0x28] sm:$0xff] %v297_v6  ;;  %307 = vst [vmem:[#allocation7 + $0x38] sm:$0xff] %v297_v6 }
  0x53   : > { %309 = vst [vmem:[#allocation7 + $0x48] sm:$0xff] %v297_v6  ;;  %311 = vst [vmem:[#allocation7 + $0x58] sm:$0xff] %v297_v6 }
  0x54   : > { %313 = vst [vmem:[#allocation7 + $0x68] sm:$0xff] %v297_v6  ;;  %315 = vst [vmem:[#allocation7 + $0x78] sm:$0xff] %v297_v6 }
  0x55   : > { %317 = vst [vmem:[#allocation7 + $0x88] sm:$0xff] %v297_v6  ;;  %319 = vst [vmem:[#allocation7 + $0x98] sm:$0xff] %v297_v6 }
  0x56   : > { %321 = vst [vmem:[#allocation7 + $0xa8] sm:$0xff] %v297_v6  ;;  %323 = vst [vmem:[#allocation7 + $0xb8] sm:$0xff] %v297_v6 }
  0x57   : > { %325 = vst [vmem:[#allocation7 + $0xc8] sm:$0xff] %v297_v6  ;;  %327 = vst [vmem:[#allocation7 + $0xd8] sm:$0xff] %v297_v6 }
  0x58   : > { %329 = vst [vmem:[#allocation7 + $0xe8] sm:$0xff] %v297_v6  ;;  %331 = vst [vmem:[#allocation7 + $0xf8] sm:$0xff] %v297_v6 }
  0x59 PF: > { %v349_v7 = vld [vmem:[%s1425_s5 + $0x8] sm:$0xf]  ;;  %vm399_vm0 = vcmask 1043456   ;;  %v348_v8 = vld [vmem:[%s1425_s5] sm:$0xff]  ;;  %vm350_vm1 = vcmask 97280   ;;  %v1301_v33 = vmov 0.0  }
  0x5a   : > { %v332_v9 = vld [vmem:[%s1566_s0] sm:$0xff]  ;;  %1045 = vmatprep.subr.msk.mxu0 %vm399_vm0, %v349_v7  ;;  %v333_v10 = vld [vmem:[%s1566_s0 + $0x8] sm:$0xff]  ;;  %v334_v11 = vld [vmem:[%s1566_s0 + $0x10] sm:$0xff]  ;;  %725 = vmatprep.mubr.f32.mxu1 %v1301_v33  ;;  %vm588_vm2 = vcmask 261120   ;;  %p1533_p7 = scmp.eq.s32.totalorder %s974_s21, 11 }
  0x5b   : > { %1049 = vmatprep.mubr.msk.f32.mxu0 %vm350_vm1, %v332_v9  ;;  %1046 = vmatpush3.msk.msra.mxu0 %vm399_vm0, %v349_v7  ;;  %v335_v12 = vld [vmem:[%s1566_s0 + $0x18] sm:$0xff]  ;;  %v586_v14 = vld [vmem:[%s1431_s10 + $0x30] sm:$0xff]  ;;  %v585_v15 = vld [vmem:[%s1431_s10 + $0x28] sm:$0xff] }
  0x5c   : > { %1047 = vmatprep.subr.mxu0 %v348_v8  ;;  %v587_v13 = vld [vmem:[%s1431_s10 + $0x38] sm:$0xff]  ;;  %v336_v16 = vld [vmem:[%s1566_s0 + $0x20] sm:$0xff]  ;;  %v337_v19 = vld [vmem:[%s1566_s0 + $0x28] sm:$0xff] }
  0x5d   : > { %1048 = vmatpush3.msra.mxu0 %v348_v8  ;;  %v584_v17 = vld [vmem:[%s1431_s10 + $0x20] sm:$0xff]  ;;  %1073 = vmatprep.subr.mxu1 %v587_v13  ;;  %v583_v18 = vld [vmem:[%s1431_s10 + $0x18] sm:$0xff]  ;;  %v338_v20 = vld [vmem:[%s1566_s0 + $0x30] sm:$0xff] }
  0x5e   : > { %1050 = vmatmul.mubr.msk.f32.vlgmr.msra.gmra.mxu0 %vm350_vm1, %v333_v10  ;;  %661 = vmatprep.subr.mxu0 %v587_v13  ;;  %v339_v21 = vld [vmem:[%s1566_s0 + $0x38] sm:$0xff]  ;;  %v340_v22 = vld [vmem:[%s1566_s0 + $0x40] sm:$0xff]  ;;  %v341_v23 = vld [vmem:[%s1566_s0 + $0x48] sm:$0xff] }
  0x5f   : > { %1052 = vmatprep.mubr.msk.f32.mxu0 %vm350_vm1, %v334_v11  ;;  %662 = vmatpush1.msra.mxu0 %v586_v14  ;;  %v342_v24 = vld [vmem:[%s1566_s0 + $0x50] sm:$0xff]  ;;  %v343_v25 = vld [vmem:[%s1566_s0 + $0x58] sm:$0xff]  ;;  %v344_v26 = vld [vmem:[%s1566_s0 + $0x60] sm:$0xff] }
  0x60   : > { %1077 = vmatpush1.msra.mxu1 %v586_v14  ;;  %663 = vmatprep.subr.mxu0 %v585_v15  ;;  %v345_v27 = vld [vmem:[%s1566_s0 + $0x68] sm:$0xff]  ;;  %v346_v28 = vld [vmem:[%s1566_s0 + $0x70] sm:$0xff]  ;;  %v347_v29 = vld [vmem:[%s1566_s0 + $0x78] sm:$0xff] }
  0x61   : > { %664 = vmatpush1.msra.mxu0 %v584_v17  ;;  %1074 = vmatprep.subr.mxu1 %v585_v15  ;;  %v582_v30 = vld [vmem:[%s1431_s10 + $0x10] sm:$0xff]  ;;  %v581_v31 = vld [vmem:[%s1431_s10 + $0x8] sm:$0xff]  ;;  %v580_v32 = vld [vmem:[%s1431_s10] sm:$0xff]  ;;  %s1302_s10 = smov [#allocation7]  }
  0x62   : > { %1053 = vmatmul.mubr.msk.f32.gmra.mxu0 %vm350_vm1, %v335_v12  ;;  %665 = vmatprep.subr.mxu0 %v583_v18  ;;  %v548_v50 = vld [vmem:[#allocation7] sm:$0xff]  ;;  %v549_v52 = vld [vmem:[#allocation7 + $0x8] sm:$0xff]  ;;  %v550_v55 = vld [vmem:[#allocation7 + $0x10] sm:$0xff]  ;;  %s872_s8 = sshll.u32 %s1302_s10, 4  ;;  %s873_s8 = int_to_ptr.vmem [resolvable:$true] %s872_s8 }
  0x63   : > { %1055 = vmatprep.mubr.msk.f32.mxu0 %vm350_vm1, %v336_v16  ;;  %1078 = vmatpush1.msra.mxu1 %v584_v17  ;;  %v551_v58 = vld [vmem:[#allocation7 + $0x18] sm:$0xff]  ;;  %v552_v61 = vld [vmem:[#allocation7 + $0x20] sm:$0xff]  ;;  %v553_v2 = vld [vmem:[#allocation7 + $0x28] sm:$0xff]  ;;  %s1211_s29 = scalar_lea.vmem %s873_s8, 4096  ;;  %p1218_p5 = scmp.lt.s32.totalorder %s873_s8, %s873_s8 }
  0x64   : > { %1075 = vmatprep.subr.mxu1 %v583_v18  ;;  %666 = vmatpush1.msra.mxu0 %v582_v30  ;;  %v556_v62 = vld [vmem:[#allocation7 + $0x40] sm:$0xff]  ;;  %v557_v3 = vld [vmem:[#allocation7 + $0x48] sm:$0xff]  ;;  %v554_v8 = vld [vmem:[#allocation7 + $0x30] sm:$0xff]  ;;  %p1212_p10 = scmp.ne.s32.totalorder %s873_s8, %s1211_s29  ;;  %p1219_p6 = scmp.lt.s32.totalorder %s1211_s29, %s1211_s29 }
  0x65   : > { %1079 = vmatpush1.msra.mxu1 %v582_v30  ;;  %667 = vmatprep.subr.mxu0 %v581_v31  ;;  %v558_v9 = vld [vmem:[#allocation7 + $0x50] sm:$0xff]  ;;  %v555_v14 = vld [vmem:[#allocation7 + $0x38] sm:$0xff] }
  0x66   : > { %1056 = vmatmul.mubr.msk.f32.gmra.mxu0 %vm350_vm1, %v337_v19  ;;  %1076 = vmatprep.subr.mxu1 %v581_v31  ;;  %v559_v15 = vld [vmem:[#allocation7 + $0x58] sm:$0xff]  ;;  %p1213_p3 = pnand %p1212_p10, %p1533_p7  ;;  %p1220_p8 = por %p1219_p6, %p1218_p5 }
  0x67   : > { %1058 = vmatprep.mubr.msk.f32.mxu0 %vm350_vm1, %v338_v20  ;;  %668 = vmatpush1.msra.mxu0 %v580_v32  ;;  %v560_v20 = vld [vmem:[#allocation7 + $0x60] sm:$0xff]  ;;  %v563_v30 = vld [vmem:[#allocation7 + $0x78] sm:$0xff] }
  0x68   : > { %1080 = vmatpush1.msra.mxu1 %v580_v32  ;;  %p1214_p4 = pneg %p1213_p3 }
  0x6a   : > { %1059 = vmatmul.mubr.msk.f32.gmra.mxu0 %vm350_vm1, %v339_v21  ;;  %p1221_p11 = pnand %p1220_p8, %p1214_p4 }
  0x6b   : > { %1061 = vmatprep.mubr.msk.f32.mxu0 %vm350_vm1, %v340_v22 }
  0x6e   : > { %1062 = vmatmul.mubr.msk.f32.gmra.mxu0 %vm350_vm1, %v341_v23 }
  0x6f   : > { %1064 = vmatprep.mubr.msk.f32.mxu0 %vm350_vm1, %v342_v24  ;;  %v561_v24 = vld [vmem:[#allocation7 + $0x68] sm:$0xff] }
  0x72   : > { %1065 = vmatmul.mubr.msk.f32.gmra.mxu0 %vm350_vm1, %v343_v25 }
  0x73   : > { %1067 = vmatprep.mubr.msk.f32.mxu0 %vm350_vm1, %v344_v26 }
  0x76   : > { %1068 = vmatmul.mubr.msk.f32.gmra.mxu0 %vm350_vm1, %v345_v27  ;;  %v562_v27 = vld [vmem:[#allocation7 + $0x70] sm:$0xff] }
  0x77   : > { %1070 = vmatprep.mubr.msk.f32.mxu0 %vm350_vm1, %v346_v28 }
  0x7a   : > { %1071 = vmatmul.mubr.msk.f32.gmra.mxu0 %vm350_vm1, %v347_v29 }
  0x7b   : > { %701 = vmatprep.mubr.f32.mxu0 %v1301_v33 }
 0x11e   : > { %v1051_v34 = vpop.f32.mrf.mxu0 }
 0x120   : > { %v469_v35 = vpop.f32.mrf.mxu0 }
 0x121   : > { %1005 = vmatmul.mubr.msk.f32.vlgmr.msra.gmra.mxu0 %vm588_vm2, %v469_v35 }
 0x122   : > { %v1054_v36 = vpop.f32.mrf.mxu0  ;;  %707 = vmatprep.mubr.f32.mxu0 %v1301_v33 }
 0x124   : > { %v479_v37 = vpop.f32.mrf.mxu0 }
 0x125   : > { %1006 = vmatmul.mubr.msk.f32.gmra.mxu0 %vm588_vm2, %v1051_v34 }
 0x126   : > { %v1057_v38 = vpop.f32.mrf.mxu0  ;;  %713 = vmatprep.mubr.f32.mxu0 %v1301_v33 }
 0x128   : > { %v489_v39 = vpop.f32.mrf.mxu0 }
 0x129   : > { %1007 = vmatmul.mubr.msk.f32.gmra.mxu0 %vm588_vm2, %v479_v37  ;;  %1009 = vmatmul.mubr.msk.f32.vlgmr.msra.gmra.mxu1 %vm588_vm2, %v489_v39  ;;  %v566_v39 = vld [vmem:[#allocation7 + $0x90] sm:$0xff] }
 0x12a   : > { %719 = vmatprep.mubr.f32.mxu0 %v1301_v33  ;;  %731 = vmatprep.mubr.f32.mxu1 %v1301_v33  ;;  %v1060_v40 = vpop.f32.mrf.mxu0 }
 0x12c   : > { %v499_v41 = vpop.f32.mrf.mxu0 }
 0x12d   : > { %1008 = vmatmul.mubr.msk.f32.gmra.mxu0 %vm588_vm2, %v1054_v36  ;;  %1010 = vmatmul.mubr.msk.f32.gmra.mxu1 %vm588_vm2, %v1057_v38  ;;  %v565_v36 = vld [vmem:[#allocation7 + $0x88] sm:$0xff] }
 0x12e   : > { %737 = vmatprep.mubr.f32.mxu1 %v1301_v33  ;;  %v1063_v42 = vpop.f32.mrf.mxu0 }
 0x130   : > { %v509_v43 = vpop.f32.mrf.mxu0 }
 0x131   : > { %1011 = vmatmul.mubr.msk.f32.gmra.mxu1 %vm588_vm2, %v499_v41 }
 0x132   : > { %743 = vmatprep.mubr.f32.mxu1 %v1301_v33  ;;  %v1066_v44 = vpop.f32.mrf.mxu0 }
 0x134   : > { %v519_v45 = vpop.f32.mrf.mxu0 }
 0x135   : > { %1012 = vmatmul.mubr.msk.f32.gmra.mxu1 %vm588_vm2, %v1060_v40 }
 0x136   : > { %749 = vmatprep.mubr.f32.mxu1 %v1301_v33  ;;  %v1069_v46 = vpop.f32.mrf.mxu0 }
 0x138   : > { %v529_v47 = vpop.f32.mrf.mxu0 }
 0x139   : > { %1013 = vmatmul.mubr.msk.f32.gmra.mxu1 %vm588_vm2, %v509_v43 }
 0x13a   : > { %755 = vmatprep.mubr.f32.mxu1 %v1301_v33  ;;  %v1072_v48 = vpop.f32.mrf.mxu0 }
 0x13c   : > { %v539_v49 = vpop.f32.mrf.mxu0 }
 0x13d   : > { %1014 = vmatmul.mubr.msk.f32.gmra.mxu1 %vm588_vm2, %v1063_v42  ;;  %v567_v42 = vld [vmem:[#allocation7 + $0x98] sm:$0xff] }
 0x13e   : > { %761 = vmatprep.mubr.f32.mxu1 %v1301_v33 }
 0x141   : > { %1015 = vmatmul.mubr.msk.f32.gmra.mxu1 %vm588_vm2, %v519_v45  ;;  %v568_v45 = vld [vmem:[#allocation7 + $0xa0] sm:$0xff] }
 0x142   : > { %767 = vmatprep.mubr.f32.mxu1 %v1301_v33 }
 0x145   : > { %1016 = vmatmul.mubr.msk.f32.gmra.mxu1 %vm588_vm2, %v1066_v44 }
 0x146   : > { %773 = vmatprep.mubr.f32.mxu1 %v1301_v33 }
 0x149   : > { %1017 = vmatmul.mubr.msk.f32.gmra.mxu1 %vm588_vm2, %v529_v47 }
 0x14a   : > { %779 = vmatprep.mubr.f32.mxu1 %v1301_v33 }
 0x14d   : > { %1018 = vmatmul.mubr.msk.f32.gmra.mxu1 %vm588_vm2, %v1069_v46 }
 0x14e   : > { %785 = vmatprep.mubr.f32.mxu1 %v1301_v33 }
 0x151   : > { %1019 = vmatmul.mubr.msk.f32.gmra.mxu1 %vm588_vm2, %v539_v49 }
 0x152   : > { %791 = vmatprep.mubr.f32.mxu1 %v1301_v33  ;;  %v564_v33 = vld [vmem:[#allocation7 + $0x80] sm:$0xff] }
 0x155   : > { %1020 = vmatmul.mubr.msk.f32.gmra.mxu1 %vm588_vm2, %v1072_v48  ;;  %v569_v48 = vld [vmem:[#allocation7 + $0xa8] sm:$0xff] }
 0x1e1   : > { %v703_v51 = vpop.f32.mrf.mxu0 }
 0x1e2   : > { %v798_v53 = vadd.f32 %v703_v51, %v548_v50  ;;  %v570_v51 = vld [vmem:[#allocation7 + $0xb0] sm:$0xff] }
 0x1e3   : > { %v705_v54 = vpop.f32.mrf.mxu0 }
 0x1e4   : > { %830 = vst [vmem:[#allocation7] sm:$0xff] %v798_v53  ;;  %v799_v56 = vadd.f32 %v705_v54, %v549_v52  ;;  %v571_v54 = vld [vmem:[#allocation7 + $0xb8] sm:$0xff] }
 0x1e5   : > { %v709_v57 = vpop.f32.mrf.mxu0 }
 0x1e6   : > { %831 = vst [vmem:[#allocation7 + $0x8] sm:$0xff] %v799_v56  ;;  %v800_v59 = vadd.f32 %v709_v57, %v550_v55  ;;  %v572_v57 = vld [vmem:[#allocation7 + $0xc0] sm:$0xff] }
 0x1e7   : > { %v711_v60 = vpop.f32.mrf.mxu0 }
 0x1e8   : > { %832 = vst [vmem:[#allocation7 + $0x10] sm:$0xff] %v800_v59  ;;  %v801_v63 = vadd.f32 %v711_v60, %v551_v58  ;;  %v573_v60 = vld [vmem:[#allocation7 + $0xc8] sm:$0xff] }
 0x1e9   : > { %v715_v0 = vpop.f32.mrf.mxu0  ;;  %v727_v1 = vpop.f32.mrf.mxu1 }
 0x1ea   : > { %833 = vst [vmem:[#allocation7 + $0x18] sm:$0xff] %v801_v63  ;;  %v802_v4 = vadd.f32 %v715_v0, %v552_v61  ;;  %v806_v5 = vadd.f32 %v727_v1, %v556_v62  ;;  %v574_v63 = vld [vmem:[#allocation7 + $0xd0] sm:$0xff] }
 0x1eb   : > { %v717_v6 = vpop.f32.mrf.mxu0  ;;  %v729_v7 = vpop.f32.mrf.mxu1 }
 0x1ec   : > { %834 = vst [vmem:[#allocation7 + $0x20] sm:$0xff] %v802_v4  ;;  %838 = vst [vmem:[#allocation7 + $0x40] sm:$0xff] %v806_v5  ;;  %v803_v10 = vadd.f32 %v717_v6, %v553_v2  ;;  %v807_v11 = vadd.f32 %v729_v7, %v557_v3  ;;  %v575_v2 = vld [vmem:[#allocation7 + $0xd8] sm:$0xff]  ;;  %v576_v5 = vld [vmem:[#allocation7 + $0xe0] sm:$0xff] }
 0x1ed   : > { %v721_v12 = vpop.f32.mrf.mxu0  ;;  %v733_v13 = vpop.f32.mrf.mxu1 }
 0x1ee   : > { %835 = vst [vmem:[#allocation7 + $0x28] sm:$0xff] %v803_v10  ;;  %839 = vst [vmem:[#allocation7 + $0x48] sm:$0xff] %v807_v11  ;;  %v804_v16 = vadd.f32 %v721_v12, %v554_v8  ;;  %v808_v17 = vadd.f32 %v733_v13, %v558_v9  ;;  %v577_v8 = vld [vmem:[#allocation7 + $0xe8] sm:$0xff]  ;;  %v578_v11 = vld [vmem:[#allocation7 + $0xf0] sm:$0xff] }
 0x1ef   : > { %v723_v18 = vpop.f32.mrf.mxu0  ;;  %v735_v19 = vpop.f32.mrf.mxu1 }
 0x1f0   : > { %836 = vst [vmem:[#allocation7 + $0x30] sm:$0xff] %v804_v16  ;;  %840 = vst [vmem:[#allocation7 + $0x50] sm:$0xff] %v808_v17  ;;  %v805_v21 = vadd.f32 %v723_v18, %v555_v14  ;;  %v809_v22 = vadd.f32 %v735_v19, %v559_v15  ;;  %v579_v14 = vld [vmem:[#allocation7 + $0xf8] sm:$0xff] }
 0x1f1   : > { %v739_v23 = vpop.f32.mrf.mxu1 }
 0x1f2   : > { %837 = vst [vmem:[#allocation7 + $0x38] sm:$0xff] %v805_v21  ;;  %841 = vst [vmem:[#allocation7 + $0x58] sm:$0xff] %v809_v22  ;;  %v810_v25 = vadd.f32 %v739_v23, %v560_v20 }
 0x1f3   : > { %v741_v26 = vpop.f32.mrf.mxu1 }
 0x1f4   : > { %842 = vst [vmem:[#allocation7 + $0x60] sm:$0xff] %v810_v25  ;;  %v811_v28 = vadd.f32 %v741_v26, %v561_v24 }
 0x1f5   : > { %v745_v29 = vpop.f32.mrf.mxu1 }
 0x1f6   : > { %843 = vst [vmem:[#allocation7 + $0x68] sm:$0xff] %v811_v28  ;;  %v812_v31 = vadd.f32 %v745_v29, %v562_v27 }
 0x1f7   : > { %v747_v32 = vpop.f32.mrf.mxu1 }
 0x1f8   : > { %844 = vst [vmem:[#allocation7 + $0x70] sm:$0xff] %v812_v31  ;;  %v813_v34 = vadd.f32 %v747_v32, %v563_v30 }
 0x1f9   : > { %v751_v35 = vpop.f32.mrf.mxu1 }
 0x1fa   : > { %845 = vst [vmem:[#allocation7 + $0x78] sm:$0xff] %v813_v34  ;;  %v814_v37 = vadd.f32 %v751_v35, %v564_v33 }
 0x1fb   : > { %v753_v38 = vpop.f32.mrf.mxu1 }
 0x1fc   : > { %846 = vst [vmem:[#allocation7 + $0x80] sm:$0xff] %v814_v37  ;;  %v815_v40 = vadd.f32 %v753_v38, %v565_v36 }
 0x1fd   : > { %v757_v41 = vpop.f32.mrf.mxu1 }
 0x1fe   : > { %847 = vst [vmem:[#allocation7 + $0x88] sm:$0xff] %v815_v40  ;;  %v816_v43 = vadd.f32 %v757_v41, %v566_v39 }
 0x1ff   : > { %v759_v44 = vpop.f32.mrf.mxu1 }
 0x200   : > { %848 = vst [vmem:[#allocation7 + $0x90] sm:$0xff] %v816_v43  ;;  %v817_v46 = vadd.f32 %v759_v44, %v567_v42 }
 0x201   : > { %v763_v47 = vpop.f32.mrf.mxu1 }
 0x202   : > { %849 = vst [vmem:[#allocation7 + $0x98] sm:$0xff] %v817_v46  ;;  %v818_v49 = vadd.f32 %v763_v47, %v568_v45 }
 0x203   : > { %v765_v50 = vpop.f32.mrf.mxu1 }
 0x204   : > { %850 = vst [vmem:[#allocation7 + $0xa0] sm:$0xff] %v818_v49  ;;  %v819_v52 = vadd.f32 %v765_v50, %v569_v48 }
 0x205   : > { %v769_v53 = vpop.f32.mrf.mxu1 }
 0x206   : > { %851 = vst [vmem:[#allocation7 + $0xa8] sm:$0xff] %v819_v52  ;;  %v820_v55 = vadd.f32 %v769_v53, %v570_v51 }
 0x207   : > { %v771_v56 = vpop.f32.mrf.mxu1 }
 0x208   : > { %852 = vst [vmem:[#allocation7 + $0xb0] sm:$0xff] %v820_v55  ;;  %v821_v58 = vadd.f32 %v771_v56, %v571_v54 }
 0x209   : > { %v775_v59 = vpop.f32.mrf.mxu1 }
 0x20a   : > { %853 = vst [vmem:[#allocation7 + $0xb8] sm:$0xff] %v821_v58  ;;  %v822_v61 = vadd.f32 %v775_v59, %v572_v57 }
 0x20b   : > { %v777_v62 = vpop.f32.mrf.mxu1 }
 0x20c   : > { %854 = vst [vmem:[#allocation7 + $0xc0] sm:$0xff] %v822_v61  ;;  %v823_v0 = vadd.f32 %v777_v62, %v573_v60 }
 0x20d   : > { %v781_v1 = vpop.f32.mrf.mxu1 }
 0x20e   : > { %855 = vst [vmem:[#allocation7 + $0xc8] sm:$0xff] %v823_v0  ;;  %v824_v3 = vadd.f32 %v781_v1, %v574_v63 }
 0x20f   : > { %v783_v4 = vpop.f32.mrf.mxu1 }
 0x210   : > { %856 = vst [vmem:[#allocation7 + $0xd0] sm:$0xff] %v824_v3  ;;  %v825_v6 = vadd.f32 %v783_v4, %v575_v2 }
 0x211   : > { %v787_v7 = vpop.f32.mrf.mxu1 }
 0x212   : > { %857 = vst [vmem:[#allocation7 + $0xd8] sm:$0xff] %v825_v6  ;;  %v826_v9 = vadd.f32 %v787_v7, %v576_v5 }
 0x213   : > { %v789_v10 = vpop.f32.mrf.mxu1 }
 0x214   : > { %858 = vst [vmem:[#allocation7 + $0xe0] sm:$0xff] %v826_v9  ;;  %v827_v12 = vadd.f32 %v789_v10, %v577_v8 }
 0x215   : > { %v793_v13 = vpop.f32.mrf.mxu1 }
 0x216   : > { %859 = vst [vmem:[#allocation7 + $0xe8] sm:$0xff] %v827_v12  ;;  %v828_v15 = vadd.f32 %v793_v13, %v578_v11 }
 0x217   : > { %v795_v16 = vpop.f32.mrf.mxu1 }
 0x218   : > { %860 = vst [vmem:[#allocation7 + $0xf0] sm:$0xff] %v828_v15  ;;  %v829_v17 = vadd.f32 %v795_v16, %v579_v14 }
 0x21a   : > { %861 = vst [vmem:[#allocation7 + $0xf8] sm:$0xff] %v829_v17 }
 0x21b   : > { %1224 = shalt.err (!%p1221_p11)
}
 0x21c   : > { %s1303_s6 = smov 256   ;;  %s1304_s21 = smov 16  }
 0x21d   : > { %1086 = dma.vmem_to_hbm [thread:$0]  (%p1533_p7), %s873_s8, 4096, %s1570_s4, [#allocation4], %s1303_s6, %s1303_s6, %s1304_s21  }
 0x21e   : > { %1268 = dma.done.wait (%p1533_p7), [#allocation4], 4096  }
 0x21f   : > { %1270 = vsyncadd (%p1533_p7), [#allocation4], 4294963200 }
 0x220 PF: > { %s21_s20 = sadd.s32 1, %s1293_s20   ;;  %s1576_s15 = smov %s1277_s16 }
 0x221   : > { %p18_p12 = scmp.ge.s32.totalorder %s21_s20, 14   ;;  %s1577_s16 = smov %s1281_s17 }
 0x222   : > { %s1578_s17 = smov %s1381_s27  ;;  %s1579_s18 = smov %s1289_s19 }
 0x223   : > { %s1580_s19 = smov %s1582_s22  ;;  %20 = sbr.rel (!%p18_p12) target bundleno = 7 (0x7), region = 94 }
 0x228   :  { %888 = vsyncpa [#allocation3], 1 }
 0x229   :  { %890 = vsyncpa [#allocation3 + $0x1], 1 }
 0x22a   :  { %891 = vsyncpa [#allocation6], 1 }
 0x22b   :  { %893 = vsyncpa [#allocation6 + $0x1], 1 }
 0x22c   :  { %894 = vsyncpa [#allocation4], 1 }
 0x22d   :  { %896 = vsyncpa [#allocation4 + $0x1], 1 }

</bundles_post_ra>
